<compile_context>
chip_gen: v5e
topology: v5e:2x2
jax: 0.10.0
libtpu: 0.0.40
codegen_flags: <defaults>
</compile_context>

<pallas_src>
import jax
import jax.numpy as jnp
import numpy as np
from jax.experimental import pallas as pl
from jax.experimental.pallas import tpu as pltpu

_STAGING_DTYPE = jnp.bfloat16      # HBM/MXU staging dtype; accumulation stays f32


def _round_up(x, m):
    return (x + m - 1) // m * m


def _vmem_estimate(rows, ow, c, in_bytes):
    """Rough per-step VMEM footprint (double-buffered inputs/outputs + intermediates)."""
    sub = _round_up(ow + 1, 8)
    slab = rows * sub * 128 * in_bytes          # Z slab view (lanes padded in VMEM)
    halo = 8 * sub * 128 * in_bytes             # 1-row halo view
    outb = rows * ow * 128 * 4                  # output tile (f32, 128 lanes)
    interm = rows * ow * (8 * c * in_bytes + 128 * 4)   # patch + f32 accumulator
    return 2 * (slab + halo + outb) + interm


def _pick_rows(oh, ow, n, c, in_bytes):
    """Output rows per grid step: rows | oh, ~2k pixels/step, >=2 steps, even total."""
    target_pixels = 2048
    budget = 10 * 1024 * 1024
    cands = []
    for r in range(1, oh + 1):
        if oh % r:
            continue
        if n == 1 and oh > 1 and (oh // r) < 2:      # keep >= 2 grid steps for overlap
            continue
        if r * ow > target_pixels and r > 1:
            continue
        if _vmem_estimate(r, ow, c, in_bytes) > budget and r > 1:
            continue
        cands.append(r)
    if not cands:
        cands = [1]
    # Prefer an even total step count so both v7x TensorCores get equal work.
    even = [r for r in cands if (n * (oh // r)) % 2 == 0]
    return max(even) if even else max(cands)


def _head_conv_kernel(za_ref, zb_ref, w_ref, b_ref, o_ref):
    """One (batch, output-row-tile) step.

    za_ref: (1, rows, OW+1, C)   Z_pad rows [i*rows, (i+1)*rows)        (staging dtype)
    zb_ref: (1, 1,    OW+1, C)   Z_pad row  (i+1)*rows (bottom halo)
    w_ref : (4*C, 128)           packed 2x2 weights, cout zero-padded   (staging dtype)
    b_ref : (1, 128)             bias, zero-padded                      (f32)
    o_ref : (1, rows, OW, 128)   NHWC output tile, channel padded
    """
    rows, ow1, c = za_ref.shape[1], za_ref.shape[2], za_ref.shape[3]
    ow = ow1 - 1
    cout_p = o_ref.shape[3]

    z0 = za_ref[0]                                        # rows for tap dy = 0
    halo = zb_ref[0]
    if rows > 1:
        z1 = jnp.concatenate([z0[1:], halo], axis=0)      # rows for tap dy = 1
    else:
        z1 = halo

    def taps(z):                                          # contiguous 2x2-conv taps
        left = z[:, :ow, :].reshape(rows * ow, c)         # dx = 0
        right = z[:, 1:, :].reshape(rows * ow, c)         # dx = 1
        return left, right

    a00, a01 = taps(z0)
    a10, a11 = taps(z1)
    patch = jnp.concatenate([a00, a01, a10, a11], axis=-1)      # (tm, 4C) in VMEM

    acc = jnp.dot(patch, w_ref[...], preferred_element_type=jnp.float32)
    acc = acc + b_ref[...]
    y = acc / (1.0 + jnp.exp(-acc))                       # exact SiLU, f32, off crit path
    o_ref[0] = y.reshape(rows, ow, cout_p).astype(o_ref.dtype)


@jax.jit
def head_upsample_forward(x1, x2, weight, bias):
    """Pallas TPU forward of head_upsample (NCHW in, NCHW out, PyTorch parity)."""
    n, c1, h, w = x1.shape
    n2, c2, h2, w2 = x2.shape
    assert n2 == n and h == 2 * h2 and w == 2 * w2 and h % 2 == 0 and w % 2 == 0
    cin = c1 + c2
    cout = weight.shape[0]
    assert weight.shape == (cout, cin, 3, 3)
    oh, ow = h // 2, w // 2                       # k=3, s=2, p=1 on even H/W
    C = 4 * c1 + c2
    cout_p = _round_up(cout, 128)
    sdt = _STAGING_DTYPE

    # ---- Z: space-to-depth(x1) ++ x2, NHWC, top/left zero pad, bf16 staging. ----------
    x1n = jnp.transpose(x1, (0, 2, 3, 1))                     # (n, h,  w,  c1)
    x2n = jnp.transpose(x2, (0, 2, 3, 1))                     # (n, oh, ow, c2)
    x1s = x1n.reshape(n, oh, 2, ow, 2, c1).transpose(0, 1, 3, 2, 4, 5)
    x1s = x1s.reshape(n, oh, ow, 4 * c1)                      # phase blocks [ee,eo,oe,oo]
    z = jnp.concatenate([x1s, x2n], axis=-1).astype(sdt)      # (n, oh, ow, C)
    z_pad = jnp.pad(z, ((0, 0), (1, 0), (1, 0), (0, 0)))      # (n, oh+1, ow+1, C)

    # ---- weights: fold upsample, rewrite as 2x2 conv over Z, pad cout to 128 lanes. ----
    w1 = weight[:, :c1]                                       # (cout, c1, 3, 3)
    w2 = weight[:, c1:]                                       # (cout, c2, 3, 3)
    t1 = lambda kh, kw: w1[:, :, kh, kw].T                    # (c1, cout)
    t2 = lambda kh, kw: w2[:, :, kh, kw].T                    # (c2, cout)
    z1c = jnp.zeros((c1, cout), weight.dtype)
    w_taps = [
        # (dy=0, dx=0): channel blocks [ee, eo, oe, oo, x2]
        jnp.concatenate([z1c, z1c, z1c, t1(0, 0), t2(0, 0)], axis=0),
        # (dy=0, dx=1)
        jnp.concatenate([z1c, z1c, t1(0, 1), t1(0, 2), t2(0, 1) + t2(0, 2)], axis=0),
        # (dy=1, dx=0)
        jnp.concatenate([z1c, t1(1, 0), z1c, t1(2, 0), t2(1, 0) + t2(2, 0)], axis=0),
        # (dy=1, dx=1)
        jnp.concatenate([t1(1, 1), t1(1, 2), t1(2, 1), t1(2, 2),
                         t2(1, 1) + t2(1, 2) + t2(2, 1) + t2(2, 2)], axis=0),
    ]
    wk = jnp.concatenate(w_taps, axis=0)                      # (4C, cout)
    wk = jnp.pad(wk, ((0, 0), (0, cout_p - cout))).astype(sdt)        # (4C, 128)
    bk = jnp.pad(bias, (0, cout_p - cout)).reshape(1, cout_p).astype(jnp.float32)

    # ---- tiling: rows | oh so the halo index and output blocks stay aligned. -----------
    rows = _pick_rows(oh, ow, n, C, jnp.dtype(sdt).itemsize)
    n_tiles = oh // rows
    ow1 = ow + 1

    out_nhwc = pl.pallas_call(
        _head_conv_kernel,
        out_shape=jax.ShapeDtypeStruct((n, oh, ow, cout_p), x1.dtype),
        grid_spec=pltpu.PrefetchScalarGridSpec(
            num_scalar_prefetch=0,
            grid=(n, n_tiles),
            in_specs=[
                # Z slab for this row tile (dy=0 rows).
                pl.BlockSpec((1, rows, ow1, C), lambda b, i: (b, i, 0, 0)),
                # Same array again: the single bottom-halo row (block size 1 => element idx).
                pl.BlockSpec((1, 1, ow1, C), lambda b, i: (b, (i + 1) * rows, 0, 0)),
                pl.BlockSpec((4 * C, cout_p), lambda b, i: (0, 0)),   # weights, resident
                pl.BlockSpec((1, cout_p), lambda b, i: (0, 0)),       # bias, resident
            ],
            out_specs=pl.BlockSpec((1, rows, ow, cout_p), lambda b, i: (b, i, 0, 0)),
        ),
        compiler_params=pltpu.CompilerParams(
            dimension_semantics=("parallel", "parallel"),
            vmem_limit_bytes=32 * 1024 * 1024,
        ),
    )(z_pad, z_pad, wk, bk)

    # Kept only for NCHW parity with the PyTorch module; a fused consumer should read the
    # lane-dense padded-NHWC tensor above directly and skip these output passes.
    # TODO(synk): expose the padded NHWC output to downstream ops to drop this epilogue.
    return jnp.transpose(out_nhwc[..., :cout], (0, 3, 1, 2))


def _reference(x1, x2, weight, bias):
    """Pure-JAX reference of the PyTorch forward."""
    x2u = jnp.repeat(jnp.repeat(x2, 2, axis=2), 2, axis=3)
    x = jnp.concatenate([x1, x2u], axis=1)
    y = jax.lax.conv_general_dilated(
        x, weight, window_strides=(2, 2), padding=((1, 1), (1, 1)),
        dimension_numbers=("NCHW", "OIHW", "NCHW"))
    y = y + bias[None, :, None, None]
    return y * jax.nn.sigmoid(y)


if __name__ == "__main__":
    key = jax.random.PRNGKey(0)
    k1, k2, kw_, kb_ = jax.random.split(key, 4)
    # x1: (N, C1, H, W); x2: (N, C2, H/2, W/2); head in_channels = C1 + C2 = 8
    x1 = jax.random.normal(k1, (2, 4, 16, 16), dtype=jnp.float32)
    x2 = jax.random.normal(k2, (2, 4, 8, 8), dtype=jnp.float32)
    # Deterministic synthetic parameters (PyTorch Conv2d layout: OIHW weight, (O,) bias)
    weight = jax.random.normal(kw_, (80, 8, 3, 3), dtype=jnp.float32) * 0.1
    bias = jax.random.normal(kb_, (80,), dtype=jnp.float32) * 0.1

    out = jax.block_until_ready(head_upsample_forward(x1, x2, weight, bias))
    assert out.shape == (2, 80, 8, 8), out.shape

    ref = jax.block_until_ready(_reference(x1, x2, weight, bias))
    # Tolerance covers bf16 staging of Z / weights (accumulation + SiLU stay f32).
    np.testing.assert_allclose(np.asarray(out), np.asarray(ref), rtol=2e-2, atol=2e-2)
    print("KERNEL_OK")
</pallas_src>

<mosaic_0001>
module attributes {stable_mosaic.version = 11 : i64} {
  func.func @_head_conv_kernel(%arg0: i32, %arg1: i32, %arg2: memref<1x8x9x20xbf16, #tpu.memory_space<vmem>>, %arg3: memref<1x1x9x20xbf16, #tpu.memory_space<vmem>>, %arg4: memref<80x128xbf16, #tpu.memory_space<vmem>>, %arg5: memref<1x128xf32, #tpu.memory_space<vmem>>, %arg6: memref<1x8x8x128xf32, #tpu.memory_space<vmem>>) attributes {dimension_semantics = [#tpu.dimension_semantics<parallel>, #tpu.dimension_semantics<parallel>], iteration_bounds = array<i64: 2, 1>, scalar_prefetch = 0 : i64, scratch_operands = 0 : i64, tpu.core_type = #tpu.core_type<tc>, window_params = [{transform_indices = @transform_0, window_bounds = array<i64: 1, 8, 9, 20>}, {transform_indices = @transform_1, window_bounds = array<i64: 1, 1, 9, 20>}, {pipeline_mode = #tpu.pipeline_mode<synchronous>, transform_indices = @transform_2, window_bounds = array<i64: 80, 128>}, {pipeline_mode = #tpu.pipeline_mode<synchronous>, transform_indices = @transform_3, window_bounds = array<i64: 1, 128>}, {transform_indices = @transform_4, window_bounds = array<i64: 1, 8, 8, 128>}]} {
    %c0 = arith.constant 0 : index
    %c0_0 = arith.constant 0 : index
    %c0_1 = arith.constant 0 : index
    %c0_2 = arith.constant 0 : index
    %0 = vector.load %arg2[%c0, %c0_0, %c0_1, %c0_2] : memref<1x8x9x20xbf16, #tpu.memory_space<vmem>>, vector<1x8x9x20xbf16>
    %1 = vector.shape_cast %0 : vector<1x8x9x20xbf16> to vector<8x9x20xbf16>
    %c0_3 = arith.constant 0 : index
    %c0_4 = arith.constant 0 : index
    %c0_5 = arith.constant 0 : index
    %c0_6 = arith.constant 0 : index
    %2 = vector.load %arg3[%c0_3, %c0_4, %c0_5, %c0_6] : memref<1x1x9x20xbf16, #tpu.memory_space<vmem>>, vector<1x1x9x20xbf16>
    %3 = vector.shape_cast %2 : vector<1x1x9x20xbf16> to vector<1x9x20xbf16>
    %4 = vector.extract_strided_slice %1 {offsets = [1, 0, 0], sizes = [7, 9, 20], strides = [1, 1, 1]} : vector<8x9x20xbf16> to vector<7x9x20xbf16>
    %5 = tpu.concatenate %4, %3 in 0 : vector<7x9x20xbf16>, vector<1x9x20xbf16> -> vector<8x9x20xbf16>
    %6 = vector.extract_strided_slice %1 {offsets = [0, 0, 0], sizes = [8, 8, 20], strides = [1, 1, 1]} : vector<8x9x20xbf16> to vector<8x8x20xbf16>
    %7 = vector.shape_cast %6 : vector<8x8x20xbf16> to vector<64x20xbf16>
    %8 = vector.extract_strided_slice %1 {offsets = [0, 1, 0], sizes = [8, 8, 20], strides = [1, 1, 1]} : vector<8x9x20xbf16> to vector<8x8x20xbf16>
    %9 = vector.shape_cast %8 : vector<8x8x20xbf16> to vector<64x20xbf16>
    %10 = vector.extract_strided_slice %5 {offsets = [0, 0, 0], sizes = [8, 8, 20], strides = [1, 1, 1]} : vector<8x9x20xbf16> to vector<8x8x20xbf16>
    %11 = vector.shape_cast %10 : vector<8x8x20xbf16> to vector<64x20xbf16>
    %12 = vector.extract_strided_slice %5 {offsets = [0, 1, 0], sizes = [8, 8, 20], strides = [1, 1, 1]} : vector<8x9x20xbf16> to vector<8x8x20xbf16>
    %13 = vector.shape_cast %12 : vector<8x8x20xbf16> to vector<64x20xbf16>
    %14 = tpu.concatenate %7, %9, %11, %13 in 1 : vector<64x20xbf16>, vector<64x20xbf16>, vector<64x20xbf16>, vector<64x20xbf16> -> vector<64x80xbf16>
    %c0_7 = arith.constant 0 : index
    %c0_8 = arith.constant 0 : index
    %15 = vector.load %arg4[%c0_7, %c0_8] : memref<80x128xbf16, #tpu.memory_space<vmem>>, vector<80x128xbf16>
    %cst = arith.constant dense<0.000000e+00> : vector<64x128xf32>
    %16 = tpu.matmul %14, %15, %cst {dimension_numbers = #tpu.dot_dimension_numbers<[1], [0], [0], [1], [0, 0, 1, 1], [], []>} : vector<64x80xbf16>, vector<80x128xbf16>, vector<64x128xf32> -> vector<64x128xf32>
    %c0_9 = arith.constant 0 : index
    %c0_10 = arith.constant 0 : index
    %17 = vector.load %arg5[%c0_9, %c0_10] : memref<1x128xf32, #tpu.memory_space<vmem>>, vector<1x128xf32>
    %18 = vector.broadcast %17 : vector<1x128xf32> to vector<64x128xf32>
    %19 = arith.addf %16, %18 : vector<64x128xf32>
    %cst_11 = arith.constant 0.000000e+00 : f32
    %20 = vector.broadcast %cst_11 : f32 to vector<64x128xf32>
    %21 = arith.subf %20, %19 : vector<64x128xf32>
    %22 = math.exp %21 : vector<64x128xf32>
    %cst_12 = arith.constant 1.000000e+00 : f32
    %23 = vector.broadcast %cst_12 : f32 to vector<64x128xf32>
    %24 = arith.addf %23, %22 : vector<64x128xf32>
    %25 = arith.divf %19, %24 : vector<64x128xf32>
    %26 = vector.shape_cast %25 : vector<64x128xf32> to vector<8x8x128xf32>
    %c0_13 = arith.constant 0 : index
    %c0_14 = arith.constant 0 : index
    %c0_15 = arith.constant 0 : index
    %c0_16 = arith.constant 0 : index
    %27 = vector.load %arg6[%c0_13, %c0_14, %c0_15, %c0_16] : memref<1x8x8x128xf32, #tpu.memory_space<vmem>>, vector<1x8x8x128xf32>
    %28 = vector.shape_cast %27 : vector<1x8x8x128xf32> to vector<8x8x128xf32>
    %29 = vector.shape_cast %26 : vector<8x8x128xf32> to vector<1x8x8x128xf32>
    tpu.vector_store %arg6[%c0_13, %c0_14, %c0_15, %c0_16], %29 {strides = array<i32>} : memref<1x8x8x128xf32, #tpu.memory_space<vmem>>, vector<1x8x8x128xf32>,
    return
  }
  func.func @transform_0(%arg0: i32, %arg1: i32) -> (i32, i32, i32, i32) {
    %c0_i32 = arith.constant 0 : i32
    %c0_i32_0 = arith.constant 0 : i32
    %c0_i32_1 = arith.constant 0 : i32
    return %arg0, %arg1, %c0_i32, %c0_i32_0 : i32, i32, i32, i32
  }
  func.func @transform_1(%arg0: i32, %arg1: i32) -> (i32, i32, i32, i32) {
    %c1_i32 = arith.constant 1 : i32
    %0 = arith.addi %arg1, %c1_i32 : i32
    %c8_i32 = arith.constant 8 : i32
    %1 = arith.muli %0, %c8_i32 : i32
    %c0_i32 = arith.constant 0 : i32
    %c0_i32_0 = arith.constant 0 : i32
    %c0_i32_1 = arith.constant 0 : i32
    return %arg0, %1, %c0_i32, %c0_i32_0 : i32, i32, i32, i32
  }
  func.func @transform_2(%arg0: i32, %arg1: i32) -> (i32, i32) {
    %c0_i32 = arith.constant 0 : i32
    %c0_i32_0 = arith.constant 0 : i32
    %c0_i32_1 = arith.constant 0 : i32
    return %c0_i32, %c0_i32_0 : i32, i32
  }
  func.func @transform_3(%arg0: i32, %arg1: i32) -> (i32, i32) {
    %c0_i32 = arith.constant 0 : i32
    %c0_i32_0 = arith.constant 0 : i32
    %c0_i32_1 = arith.constant 0 : i32
    return %c0_i32, %c0_i32_0 : i32, i32
  }
  func.func @transform_4(%arg0: i32, %arg1: i32) -> (i32, i32, i32, i32) {
    %c0_i32 = arith.constant 0 : i32
    %c0_i32_0 = arith.constant 0 : i32
    %c0_i32_1 = arith.constant 0 : i32
    return %arg0, %arg1, %c0_i32, %c0_i32_0 : i32, i32, i32, i32
  }
}

</mosaic_0001>

<bundles_post_ra>
// kernel: head_upsample_forward.1
= control target key start
LH: loop header
LB: loop body
LE: loop exit
PB: predicated region body
PF: predicated region fallthrough
CT: control target
= control target key end

     0   :  { %s1085_s15 = smov 0   ;;  %s1087_s16 = smov 0   ;;  %s1395_s0 = inlined_call_operand.vmem [shape: bf16[2,9,9,20], index: 0, kind: input, shape index: {}, may-alias: {0,1}]   ;;  %s1396_s1 = inlined_call_operand.vmem [shape: bf16[2,9,9,20], index: 1, kind: input, shape index: {}, may-alias: {0,1}]   ;;  %s1397_s2 = inlined_call_operand.vmem [shape: bf16[80,128], index: 2, kind: input, shape index: {}]   ;;  %s1398_s3 = inlined_call_operand.vmem [shape: f32[1,128], index: 3, kind: input, shape index: {}]   ;;  %s1399_s4 = inlined_call_operand.vmem [shape: f32[2,8,8,128], index: 4, kind: output, shape index: {}]  }
   0x1   :  { %s1089_s17 = smov 0  }
   0x2 LB: > { %s26_s18 = sadd.s32 1, %s1051_s16  ;;  %p916_p0 = scmp.ge.s32.totalorder %s1055_s17, 1  ;;  %s1055_s17 = sphi %s1089_s17, %s14_s17   ;;  %s1051_s16 = sphi %s1087_s16, %s1411_s16   ;;  %s1047_s15 = sphi %s1085_s15, %s1410_s15  }
   0x3   : > { %p28_p1 = scmp.ge.s32.totalorder %s26_s18, 2  ;;  %p218_p2 = scmp.lt.s32.totalorder %s1055_s17, 3 }
   0x5   : > { %s1413_s18 = smov (%p28_p1, %s26_s18), 0  ;;  %p219_p3 = pnand %p916_p0, %p218_p2 }
   0x6   : > { %p275_p4 = scmp.lt.s32.totalorder (!%p219_p3), %s1047_s15, 1  ;;  %s1057_s27 = smov (!%p219_p3), 40  }
   0x7   : > { %222 = sbr.rel (%p219_p3) target bundleno = 351 (0x15f), region = 36  ;;  %s1058_s28 = smov (!%p219_p3), 20  }
   0x8   : > { %s1059_s9 = smov (!%p219_p3), 60  }
   0xc   : > { %s1415_s15 = smov (!%p275_p4, %s1047_s15), 1  ;;  %vm332_vm0 = vsmask.f32 3328  ;;  %vm333_vm1 = vsmask.f32 7440  ;;  %v951_v43 = vld [vmem:[%s1397_s2 + $0x8] sm:$0xff] }
   0xd   : > { %s970_s19 = smul.u32 72, %s1415_s15  ;;  %vm1143_vm2 = vmor %vm332_vm0, %vm333_vm1  ;;  %vm528_vm3 = vcmask 162816   ;;  %vm541_vm4 = vcmask 326656   ;;  %vm550_vm5 = vcmask 490496   ;;  %vm603_vm6 = vcmask 654336   ;;  %s949_s20 = sshll.u32 %s1415_s15, 6 }
   0xf   : > { %s1109_s22 = scalar_lea.vmem %s1395_s0, %s970_s19  ;;  %s948_s23 = sadd.s32 64, %s970_s19 }
  0x10   : > { %v324_v0 = vld [vmem:[%s1109_s22 + $0x28] sm:$0xf]  ;;  %v326_v1 = vld [vmem:[%s1109_s22 + $0x30] sm:$0xf]  ;;  %v328_v2 = vld [vmem:[%s1109_s22 + $0x38] sm:$0xf]  ;;  %s300_s26 = scalar_lea.vmem %s1396_s1, %s948_s23 }
  0x11   : > { %v420_v3 = vshrl.u32 %v326_v1, 16  ;;  %v423_v4 = vshll.u32 %v326_v1, 16  ;;  %v434_v5 = vshrl.u32 %v328_v2, 16  ;;  %v437_v6 = vshll.u32 %v328_v2, 16  ;;  %v1115_v10 = vld [vmem:[%s1109_s22 + $0x20] sm:$0xf] }
  0x12   : > { %v474_v7 = vunpack.c.l.b16 %v324_v0  ;;  %v475_v8 = vunpack.c.l.b16 %v326_v1  ;;  %v476_v9 = vunpack.c.l.b16 %v328_v2  ;;  %v406_v11 = vshrl.u32 %v324_v0, 16  ;;  %v323_v12 = vld [vmem:[%s1109_s22 + $0x24] sm:$0x1]  ;;  %v325_v17 = vld [vmem:[%s1109_s22 + $0x2c] sm:$0x1] }
  0x13   : > { %v422_v13 = vrot.slane %v420_v3, 4  ;;  %v425_v14 = vrot.slane %v423_v4, 5  ;;  %v436_v15 = vrot.slane %v434_v5, 4  ;;  %v439_v16 = vrot.slane %v437_v6, 5  ;;  %v330_v26 = vld [vmem:[%s300_s26] sm:$0xf] }
  0x14   : > { %v1122_v18 = vpack.c.b16 %v476_v9, %v475_v8  ;;  %v505_v19 = vpack.c.b16 %v475_v8, %v474_v7  ;;  %v408_v20 = vrot.slane %v406_v11, 4  ;;  %v409_v21 = vshll.u32 %v324_v0, 16  ;;  %v1127_v27 = vld [vmem:[%s300_s26 + $0x4] sm:$0x1]  ;;  %v327_v32 = vld [vmem:[%s1109_s22 + $0x34] sm:$0x1] }
  0x15   : > { %v426_v22 = vor.u32 %v425_v14, %v422_v13  ;;  %v473_v23 = vunpack.c.l.b16 %v1115_v10  ;;  %v392_v24 = vshrl.u32 %v1115_v10, 16  ;;  %v395_v25 = vshll.u32 %v1115_v10, 16  ;;  %v329_v37 = vld [vmem:[%s1109_s22 + $0x3c] sm:$0x1]  ;;  %v1139_v42 = vld [vmem:[%s1109_s22 + $0x10] sm:$0xf] }
  0x16   : > { %511 = vrot.lane.b32.xlu1 %v505_v19, %s1057_s27  ;;  %v411_v28 = vrot.slane %v409_v21, 5  ;;  %v401_v29 = vshll.u32 %v323_v12, 16  ;;  %v415_v30 = vshll.u32 %v325_v17, 16  ;;  %v448_v31 = vshrl.u32 %v330_v26, 16  ;;  %v319_v55 = vld [vmem:[%s1109_s22 + $0x14] sm:$0x1] }
  0x17   : > { %v1133_v33 = vpack.c.b16 %v474_v7, %v473_v23  ;;  %v394_v34 = vrot.slane %v392_v24, 4  ;;  %v397_v35 = vrot.slane %v395_v25, 5  ;;  %v451_v36 = vshll.u32 %v330_v26, 16  ;;  %v1155_v60 = vld [vmem:[%s1109_s22 + $0x18] sm:$0xf]  ;;  %v950_v10 = vld [vmem:[%s1397_s2] sm:$0xff] }
  0x18   : > { %v403_v38 = vrot.slane %v401_v29, 5  ;;  %v412_v39 = vor.u32 %v411_v28, %v408_v20  ;;  %v417_v40 = vrot.slane %v415_v30, 5  ;;  %v1136_v41 = vrot.slane %v448_v31, 4  ;;  %v321_v4 = vld [vmem:[%s1109_s22 + $0x1c] sm:$0x1]  ;;  %v954_v31 = vld [vmem:[%s1397_s2 + $0x20] sm:$0xff] }
  0x19   : > { %v398_v44 = vor.u32 %v397_v35, %v394_v34  ;;  %v1147_v45 = vrot.slane %v451_v36, 5  ;;  %v457_v46 = vshll.u32 %v1127_v27, 16  ;;  %v502_v47 = vunpack.c.l.b16 %v330_v26  ;;  %v314_v7 = vld [vmem:[%s1109_s22] sm:$0xf]  ;;  %v315_v13 = vld [vmem:[%s1109_s22 + $0x4] sm:$0x1]  ;;  %956 = vmatpush.bf16.msra.mxu2 %v954_v31  ;;  %957 = vmatpush.bf16.msra.mxu3 %v954_v31 }
  0x1a   : > { %v413_v48 = vrot.slane %v412_v39, 4  ;;  %v427_v49 = vrot.slane %v426_v22, 4  ;;  %v429_v50 = vshll.u32 %v327_v32, 16  ;;  %v440_v51 = vor.u32 %v439_v16, %v436_v15  ;;  %v316_v19 = vld [vmem:[%s1109_s22 + $0x8] sm:$0xf]  ;;  %615 = vmatpush.bf16.msra.mxu0 %v954_v31  ;;  %955 = vmatpush.bf16.msra.mxu1 %v954_v31 }
  0x1b   : > { %v399_v52 = vrot.slane %v398_v44, 4  ;;  %v506_v53 = vpack.c.b16 %v502_v47, %v476_v9  ;;  %v443_v54 = vshll.u32 %v329_v37, 16  ;;  %v364_v56 = vshrl.u32 %v1139_v42, 16  ;;  %v317_v28 = vld [vmem:[%s1109_s22 + $0xc] sm:$0x1]  ;;  %v953_v44 = vld [vmem:[%s1397_s2 + $0x18] sm:$0xff]  ;;  %s1308_s22 = scalar_lea.vmem %s1399_s4, %s949_s20 }
  0x1c   : > { %v418_v57 = vsel %vm1143_vm2, %v413_v48, %v417_v40  ;;  %v431_v58 = vrot.slane %v429_v50, 5  ;;  %v441_v59 = vrot.slane %v440_v51, 4  ;;  %v367_v61 = vshll.u32 %v1139_v42, 16 }
  0x1d   : > { %v404_v62 = vsel %vm1143_vm2, %v399_v52, %v403_v38  ;;  %v1160_v63 = vunpack.c.l.b16 %v418_v57  ;;  %v445_v0 = vrot.slane %v443_v54, 5  ;;  %v366_v1 = vrot.slane %v364_v56, 4  ;;  %959 = vmatpush.bf16.msra.mxu2 %v953_v44  ;;  %960 = vmatpush.bf16.msra.mxu3 %v953_v44 }
  0x1e   : > { %v1162_v2 = vunpack.c.l.b16 %v404_v62  ;;  %513 = vrot.lane.b32.xlu1 %v506_v53, %s1057_s27  ;;  %v432_v3 = vsel %vm1143_vm2, %v427_v49, %v431_v58  ;;  %v369_v5 = vrot.slane %v367_v61, 5  ;;  %v373_v6 = vshll.u32 %v319_v55, 16  ;;  %616 = vmatpush.bf16.msra.mxu0 %v953_v44 }
  0x1f   : > { %v446_v8 = vsel %vm1143_vm2, %v441_v59, %v445_v0  ;;  %v1171_v9 = vunpack.c.l.b16 %v432_v3  ;;  %v378_v11 = vshrl.u32 %v1155_v60, 16  ;;  %v381_v12 = vshll.u32 %v1155_v60, 16  ;;  %958 = vmatpush.bf16.msra.mxu1 %v953_v44 }
  0x20   : > { %v491_v14 = vpack.c.b16 %v1160_v63, %v1162_v2  ;;  %v1178_v15 = vunpack.c.l.b16 %v446_v8  ;;  %v370_v16 = vor.u32 %v369_v5, %v366_v1  ;;  %v375_v17 = vrot.slane %v373_v6, 5  ;;  %v952_v1 = vld [vmem:[%s1397_s2 + $0x10] sm:$0xff] }
  0x21   : > { %v380_v20 = vrot.slane %v378_v11, 4  ;;  %v383_v21 = vrot.slane %v381_v12, 5  ;;  %v387_v22 = vshll.u32 %v321_v4, 16  ;;  %v336_v24 = vshrl.u32 %v314_v7, 16  ;;  %962 = vmatpush.bf16.msra.mxu2 %v952_v1  ;;  %963 = vmatpush.bf16.msra.mxu3 %v952_v1 }
  0x22   : > { %497 = vrot.lane.b32.xlu0 %v491_v14, %s1058_s28  ;;  %v492_v25 = vpack.c.b16 %v1178_v15, %v1171_v9  ;;  %v371_v26 = vrot.slane %v370_v16, 4  ;;  %v339_v29 = vshll.u32 %v314_v7, 16  ;;  %v345_v30 = vshll.u32 %v315_v13, 16  ;;  %617 = vmatpush.bf16.msra.mxu0 %v952_v1 }
  0x23   : > { %v384_v32 = vor.u32 %v383_v21, %v380_v20  ;;  %v389_v34 = vrot.slane %v387_v22, 5  ;;  %v338_v35 = vrot.slane %v336_v24, 4  ;;  %v350_v36 = vshrl.u32 %v316_v19, 16  ;;  %961 = vmatpush.bf16.msra.mxu1 %v952_v1 }
  0x24   : > { %v376_v37 = vsel %vm1143_vm2, %v371_v26, %v375_v17  ;;  %v341_v38 = vrot.slane %v339_v29, 5  ;;  %v347_v39 = vrot.slane %v345_v30, 5  ;;  %v353_v40 = vshll.u32 %v316_v19, 16 }
  0x25   : > { %v385_v47 = vrot.slane %v384_v32, 4  ;;  %v483_v48 = vunpack.c.l.b16 %v376_v37  ;;  %v352_v49 = vrot.slane %v350_v36, 4  ;;  %v359_v50 = vshll.u32 %v317_v28, 16  ;;  %965 = vmatpush.bf16.msra.mxu2 %v951_v43  ;;  %966 = vmatpush.bf16.msra.mxu3 %v951_v43 }
  0x26   : > { %v342_v51 = vor.u32 %v341_v38, %v338_v35  ;;  %v355_v52 = vrot.slane %v353_v40, 5  ;;  %v470_v53 = vunpack.c.l.b16 %v316_v19  ;;  %v471_v54 = vunpack.c.l.b16 %v1139_v42  ;;  %618 = vmatpush.bf16.msra.mxu0 %v951_v43  ;;  %v1254_v40 = vld [vmem:[%s1398_s3] ss:$0 sm:$0xff] }
  0x27   : > { %v390_v55 = vsel %vm1143_vm2, %v385_v47, %v389_v34  ;;  %v361_v56 = vrot.slane %v359_v50, 5  ;;  %v472_v57 = vunpack.c.l.b16 %v1155_v60  ;;  %v469_v58 = vunpack.c.l.b16 %v314_v7  ;;  %964 = vmatpush.bf16.msra.mxu1 %v951_v43 }
  0x28   : > { %v484_v59 = vunpack.c.l.b16 %v390_v55  ;;  %v343_v61 = vrot.slane %v342_v51, 4  ;;  %v356_v62 = vor.u32 %v355_v52, %v352_v49  ;;  %v503_v0 = vpack.c.b16 %v471_v54, %v470_v53 }
  0x29   : > { %v1200_v3 = vpack.c.b16 %v472_v57, %v471_v54  ;;  %v1202_v42 = vpack.c.b16 %v470_v53, %v469_v58  ;;  %v454_v6 = vor.u32 %v1147_v45, %v1136_v41  ;;  %v459_v8 = vrot.slane %v457_v46, 5  ;;  %968 = vmatpush.bf16.msra.mxu2 %v950_v10  ;;  %969 = vmatpush.bf16.msra.mxu3 %v950_v10 }
  0x2a   : > { %499 = vrot.lane.b32.xlu0 %v492_v25, %s1058_s28  ;;  %v490_v4 = vpack.c.b16 %v484_v59, %v483_v48  ;;  %v348_v60 = vsel %vm1143_vm2, %v343_v61, %v347_v39  ;;  %v357_v5 = vrot.slane %v356_v62, 4  ;;  %507 = vrot.lane.b32.xlu2 %v503_v0, %s1057_s27  ;;  %v518_v14 = vpack.c.b16 %v1171_v9, %v1160_v63 }
  0x2b   : > { %v481_v7 = vunpack.c.l.b16 %v348_v60  ;;  %v455_v12 = vrot.slane %v454_v6, 4  ;;  %v504_v46 = vpack.c.b16 %v473_v23, %v472_v57  ;;  %v517_v63 = vpack.c.b16 %v1162_v2, %v484_v59  ;;  %619 = vmatpush.bf16.msra.mxu0 %v950_v10  ;;  %967 = vmatpush.bf16.msra.mxu1 %v950_v10 }
  0x2c   : > { %495 = vrot.lane.b32.xlu1 %v490_v4, %s1058_s28  ;;  %v362_v11 = vsel %vm1143_vm2, %v357_v5, %v361_v56 }
  0x2d   : > { %v482_v13 = vunpack.c.l.b16 %v362_v11  ;;  %v460_v41 = vsel %vm1143_vm2, %v455_v12, %v459_v8 }
  0x2e   : > { %v515_v45 = vunpack.c.l.b16 %v460_v41 }
  0x2f   : > { %v489_v16 = vpack.c.b16 %v482_v13, %v481_v7  ;;  %v516_v27 = vpack.c.b16 %v483_v48, %v482_v13 }
  0x30   : > { %v519_v17 = vpack.c.b16 %v515_v45, %v1178_v15 }
  0x32   : > { %493 = vrot.lane.b32.xlu0 %v489_v16, %s1058_s28  ;;  %524 = vrot.lane.b32.xlu2 %v518_v14, %s1059_s9 }
  0x34   : > { %520 = vrot.lane.b32.xlu1 %v516_v27, %s1059_s9 }
  0x3a   : > { %509 = vrot.lane.b32.xlu0 %v504_v46, %s1057_s27  ;;  %526 = vrot.lane.b32.xlu2 %v519_v17, %s1059_s9 }
  0x42   : > { %522 = vrot.lane.b32.xlu2 %v517_v63, %s1059_s9 }
  0x84   : > { %v508_v23 = vpop.permute.xlu2 %507 }
  0x88   : > { %v512_v9 = vpop.permute.xlu1 %511 }
  0x8c   : > { %v525_v2 = vpop.permute.xlu2 %524 }
  0x90   : > { %v514_v19 = vpop.permute.xlu1 %513 }
  0x94   : > { %v498_v15 = vpop.permute.xlu0 %497  ;;  %v527_v25 = vpop.permute.xlu2 %526 }
  0x95   : > { %v537_v20 = vsel %vm528_vm3, %v1133_v33, %v498_v15 }
  0x96   : > { %v547_v21 = vsel %vm541_vm4, %v537_v20, %v512_v9 }
  0x97   : > { %v556_v22 = vsel %vm550_vm5, %v547_v21, %v525_v2 }
  0x98   : > { %943 = vmatmul.msk.bf16.vlgmr.msra.gmra.mxu2 %vm603_vm6, %v556_v22 }
  0x9c   : > { %v500_v24 = vpop.permute.xlu0 %499  ;;  %v523_v36 = vpop.permute.xlu2 %522 }
  0x9d   : > { %v540_v26 = vsel %vm528_vm3, %v1122_v18, %v500_v24 }
  0x9e   : > { %v496_v28 = vpop.permute.xlu1 %495  ;;  %v549_v29 = vsel %vm541_vm4, %v540_v26, %v514_v19 }
  0x9f   : > { %v558_v30 = vsel %vm550_vm5, %v549_v29, %v527_v25  ;;  %v534_v18 = vsel %vm528_vm3, %v1200_v3, %v496_v28 }
  0xa0   : > { %944 = vmatmul.msk.bf16.vlgmr.msra.gmra.mxu3 %vm603_vm6, %v558_v30 }
  0xa4   : > { %v494_v33 = vpop.permute.xlu0 %493 }
  0xa5   : > { %v531_v31 = vsel %vm528_vm3, %v1202_v42, %v494_v33 }
  0xa6   : > { %v521_v32 = vpop.permute.xlu1 %520  ;;  %v543_v34 = vsel %vm541_vm4, %v531_v31, %v508_v23 }
  0xa7   : > { %v552_v35 = vsel %vm550_vm5, %v543_v34, %v521_v32 }
  0xa8   : > { %941 = vmatmul.msk.bf16.vlgmr.msra.gmra.mxu0 %vm603_vm6, %v552_v35 }
  0xac   : > { %v510_v37 = vpop.permute.xlu0 %509 }
  0xad   : > { %v545_v38 = vsel %vm541_vm4, %v534_v18, %v510_v37 }
  0xae   : > { %v554_v39 = vsel %vm550_vm5, %v545_v38, %v523_v36 }
  0xaf   : > { %942 = vmatmul.msk.bf16.vlgmr.msra.gmra.mxu1 %vm603_vm6, %v554_v39 }
 0x11b   : > { %v631_v44 = vpop.f32.mrf.mxu2 }
 0x11c   : > { %v1257_v47 = vadd.f32 %v1254_v40, %v631_v44 }
 0x11e   : > { %v645_v48 = vsub.f32 0.0, %v1257_v47 }
 0x120   : > { %v657_v49 = vmul.f32 1.442695, %v645_v48 }
 0x122   : > { %1001 = vpow2.f32 %v657_v49 }
 0x123   : > { %v633_v50 = vpop.f32.mrf.mxu2  ;;  %v636_v51 = vpop.f32.mrf.mxu3 }
 0x124   : > { %v1261_v52 = vadd.f32 %v1254_v40, %v633_v50  ;;  %v1264_v53 = vadd.f32 %v1254_v40, %v636_v51 }
 0x125   : > { %v621_v54 = vpop.f32.mrf.mxu0 }
 0x126   : > { %v646_v55 = vsub.f32 0.0, %v1261_v52  ;;  %v647_v56 = vsub.f32 0.0, %v1264_v53  ;;  %v1269_v57 = vadd.f32 %v1254_v40, %v621_v54 }
 0x128   : > { %v1002_v58 = vpop.eup %1001  ;;  %v659_v59 = vmul.f32 1.442695, %v646_v55  ;;  %v661_v61 = vmul.f32 1.442695, %v647_v56  ;;  %v641_v62 = vsub.f32 0.0, %v1269_v57 }
 0x129   : > { %v669_v0 = vadd.f32 1.0, %v1002_v58 }
 0x12a   : > { %1003 = vpow2.f32 %v659_v59  ;;  %v649_v1 = vmul.f32 1.442695, %v641_v62 }
 0x12b   : > { %1005 = vrcp.f32 %v669_v0  ;;  %v638_v3 = vpop.f32.mrf.mxu3  ;;  %v742_v23 = vand.u32 2147483647, %v669_v0  ;;  %v744_v9 = vand.u32 2147483648, %v669_v0  ;;  %vm738_vm8 = vweird.f32 %v669_v0 }
 0x12c   : > { %1007 = vpow2.f32 %v661_v61  ;;  %v1273_v42 = vadd.f32 %v1254_v40, %v638_v3  ;;  %v626_v4 = vpop.f32.mrf.mxu1 }
 0x12d   : > { %1009 = vpow2.f32 %v649_v1  ;;  %v1276_v60 = vadd.f32 %v1254_v40, %v626_v4  ;;  %v623_v5 = vpop.f32.mrf.mxu0  ;;  %vm743_vm10 = vcmp.eq.f32.partialorder %v742_v23, 8.507059e+37  ;;  %v745_v25 = vor.u32 1.1754944e-38, %v744_v9 }
 0x12e   : > { %v648_v6 = vsub.f32 0.0, %v1273_v42  ;;  %v1280_v7 = vadd.f32 %v1254_v40, %v623_v5 }
 0x12f   : > { %v643_v8 = vsub.f32 0.0, %v1276_v60 }
 0x130   : > { %v1004_v11 = vpop.eup %1003  ;;  %v663_v12 = vmul.f32 1.442695, %v648_v6  ;;  %v642_v13 = vsub.f32 0.0, %v1280_v7 }
 0x131   : > { %v1006_v14 = vpop.eup %1005  ;;  %v1284_v16 = vadd.f32 1.0, %v1004_v11  ;;  %v653_v41 = vmul.f32 1.442695, %v643_v8 }
 0x132   : > { %v1008_v27 = vpop.eup %1007  ;;  %v734_v45 = vmul.f32 %v1006_v14, %v669_v0  ;;  %1011 = vpow2.f32 %v663_v12  ;;  %v651_v46 = vmul.f32 1.442695, %v642_v13  ;;  %vm739_vm7 = vweird.f32 %v1006_v14 }
 0x133   : > { %v1010_v17 = vpop.eup %1009  ;;  %1013 = vrcp.f32 %v1284_v16  ;;  %v1287_v43 = vadd.f32 1.0, %v1008_v27  ;;  %v757_v15 = vand.u32 2147483647, %v1284_v16  ;;  %v759_v19 = vand.u32 2147483648, %v1284_v16  ;;  %vm740_vm9 = vmor %vm738_vm8, %vm739_vm7 }
 0x134   : > { %v735_v63 = vsub.f32 1.0, %v734_v45  ;;  %v1289_v10 = vadd.f32 1.0, %v1010_v17  ;;  %1015 = vpow2.f32 %v653_v41  ;;  %v628_v22 = vpop.f32.mrf.mxu1  ;;  %vm753_vm11 = vweird.f32 %v1284_v16 }
 0x135   : > { %1017 = vpow2.f32 %v651_v46  ;;  %vm1301_vm12 = vcmp.eq.f32.partialorder %v757_v15, 8.507059e+37  ;;  %v760_v31 = vor.u32 1.1754944e-38, %v759_v19  ;;  %v772_v35 = vand.u32 2147483647, %v1287_v43 }
 0x136   : > { %v736_v2 = vmul.f32 %v1006_v14, %v735_v63  ;;  %1019 = vrcp.f32 %v1287_v43  ;;  %v1313_v36 = vadd.f32 %v1254_v40, %v628_v22  ;;  %vm768_vm13 = vweird.f32 %v1287_v43 }
 0x137   : > { %1021 = vrcp.f32 %v1289_v10  ;;  %v774_v49 = vand.u32 2147483648, %v1287_v43  ;;  %v682_v50 = vand.u32 2147483647, %v1289_v10  ;;  %vm678_vm15 = vweird.f32 %v1289_v10 }
 0x138   : > { %v1012_v20 = vpop.eup %1011  ;;  %v737_v21 = vadd.f32 %v1006_v14, %v736_v2  ;;  %vm1327_vm0 = vcmp.eq.f32.partialorder %v772_v35, 8.507059e+37  ;;  %v684_v56 = vand.u32 2147483648, %v1289_v10  ;;  %v644_v61 = vsub.f32 0.0, %v1313_v36 }
 0x139   : > { %v1014_v24 = vpop.eup %1013  ;;  %v1298_v26 = vadd.f32 1.0, %v1012_v20  ;;  %v775_v1 = vor.u32 1.1754944e-38, %v774_v49  ;;  %vm1337_vm3 = vcmp.eq.f32.partialorder %v682_v50, 8.507059e+37 }
 0x13a   : > { %v1016_v28 = vpop.eup %1015  ;;  %v741_v29 = vsel %vm740_vm9, %v1006_v14, %v737_v21  ;;  %v749_v30 = vmul.f32 %v1014_v24, %v1284_v16  ;;  %vm754_vm14 = vweird.f32 %v1014_v24  ;;  %v685_v12 = vor.u32 1.1754944e-38, %v684_v56 }
 0x13b   : > { %v1018_v32 = vpop.eup %1017  ;;  %v746_v34 = vsel %vm743_vm10, %v745_v25, %v741_v29  ;;  %1023 = vrcp.f32 %v1298_v26  ;;  %v1317_v39 = vadd.f32 1.0, %v1016_v28  ;;  %vm755_vm1 = vmor %vm753_vm11, %vm754_vm14  ;;  %v787_v13 = vand.u32 2147483647, %v1298_v26 }
 0x13c   : > { %v1020_v18 = vpop.eup %1019  ;;  %v747_v37 = vmul.f32 %v746_v34, %v1257_v47  ;;  %v750_v38 = vsub.f32 1.0, %v749_v30  ;;  %v1322_v51 = vadd.f32 1.0, %v1018_v32  ;;  %v789_v27 = vand.u32 2147483648, %v1298_v26 }
 0x13d   : > { %v1022_v44 = vpop.eup %1021  ;;  %v764_v48 = vmul.f32 %v1020_v18, %v1287_v43  ;;  %1025 = vrcp.f32 %v1317_v39  ;;  %vm769_vm2 = vweird.f32 %v1020_v18  ;;  %vm783_vm7 = vweird.f32 %v1298_v26 }
 0x13e   : > { %797 = vst [vmem:[%s1308_s22 + $0x20] sm:$0xff] %v747_v37  ;;  %v751_v40 = vmul.f32 %v1014_v24, %v750_v38  ;;  %v674_v54 = vmul.f32 %v1022_v44, %v1289_v10  ;;  %1027 = vrcp.f32 %v1322_v51  ;;  %vm679_vm4 = vweird.f32 %v1022_v44  ;;  %vm770_vm5 = vmor %vm768_vm13, %vm769_vm2 }
 0x13f   : > { %v765_v47 = vsub.f32 1.0, %v764_v48  ;;  %vm680_vm6 = vmor %vm678_vm15, %vm679_vm4  ;;  %v655_v17 = vmul.f32 1.442695, %v644_v61  ;;  %vm1359_vm9 = vcmp.eq.f32.partialorder %v787_v13, 8.507059e+37  ;;  %v790_v22 = vor.u32 1.1754944e-38, %v789_v27 }
 0x140   : > { %v752_v58 = vadd.f32 %v1014_v24, %v751_v40  ;;  %v675_v59 = vsub.f32 1.0, %v674_v54  ;;  %v714_v25 = vand.u32 2147483648, %v1317_v39  ;;  %vm708_vm13 = vweird.f32 %v1317_v39 }
 0x141   : > { %v1024_v62 = vpop.eup %1023  ;;  %v766_v0 = vmul.f32 %v1020_v18, %v765_v47  ;;  %1029 = vpow2.f32 %v655_v17  ;;  %vm693_vm15 = vweird.f32 %v1322_v51 }
 0x142   : > { %v756_v4 = vsel %vm755_vm1, %v1014_v24, %v752_v58  ;;  %v676_v5 = vmul.f32 %v1022_v44, %v675_v59  ;;  %v779_v6 = vmul.f32 %v1024_v62, %v1298_v26  ;;  %vm784_vm8 = vweird.f32 %v1024_v62 }
 0x143   : > { %v761_v8 = vsel %vm1301_vm12, %v760_v31, %v756_v4  ;;  %v767_v11 = vadd.f32 %v1020_v18, %v766_v0  ;;  %v1026_v45 = vpop.eup %1025  ;;  %vm785_vm10 = vmor %vm783_vm7, %vm784_vm8  ;;  %v697_v26 = vand.u32 2147483647, %v1322_v51  ;;  %v715_v35 = vor.u32 1.1754944e-38, %v714_v25 }
 0x144   : > { %v762_v14 = vmul.f32 %v761_v8, %v1261_v52  ;;  %v677_v16 = vadd.f32 %v1022_v44, %v676_v5  ;;  %v780_v41 = vsub.f32 1.0, %v779_v6  ;;  %v1028_v63 = vpop.eup %1027  ;;  %v704_v9 = vmul.f32 %v1026_v45, %v1317_v39 }
 0x145   : > { %v771_v46 = vsel %vm770_vm5, %v1020_v18, %v767_v11  ;;  %v689_v19 = vmul.f32 %v1028_v63, %v1322_v51  ;;  %vm709_vm11 = vweird.f32 %v1026_v45  ;;  %vm694_vm12 = vweird.f32 %v1028_v63 }
 0x146   : > { %798 = vst [vmem:[%s1308_s22 + $0x28] sm:$0xff] %v762_v14  ;;  %v776_v52 = vsel %vm1327_vm0, %v775_v1, %v771_v46  ;;  %v681_v43 = vsel %vm680_vm6, %v1022_v44, %v677_v16  ;;  %v781_v23 = vmul.f32 %v1024_v62, %v780_v41  ;;  %v705_v24 = vsub.f32 1.0, %v704_v9  ;;  %vm710_vm14 = vmor %vm708_vm13, %vm709_vm11 }
 0x147   : > { %v777_v2 = vmul.f32 %v776_v52, %v1264_v53  ;;  %v686_v10 = vsel %vm1337_vm3, %v685_v12, %v681_v43  ;;  %v712_v53 = vand.u32 2147483647, %v1317_v39  ;;  %v690_v28 = vsub.f32 1.0, %v689_v19  ;;  %vm695_vm1 = vmor %vm693_vm15, %vm694_vm12  ;;  %v1030_v44 = vpop.eup %1029 }
 0x148   : > { %v687_v20 = vmul.f32 %v686_v10, %v1269_v57  ;;  %v782_v21 = vadd.f32 %v1024_v62, %v781_v23  ;;  %v706_v30 = vmul.f32 %v1026_v45, %v705_v24  ;;  %v699_v57 = vand.u32 2147483648, %v1322_v51 }
 0x149   : > { %799 = vst [vmem:[%s1308_s22 + $0x30] sm:$0xff] %v777_v2  ;;  %v691_v31 = vmul.f32 %v1028_v63, %v690_v28  ;;  %vm713_vm0 = vcmp.eq.f32.partialorder %v712_v53, 8.507059e+37  ;;  %vm698_vm2 = vcmp.eq.f32.partialorder %v697_v26, 8.507059e+37  ;;  %v668_v39 = vadd.f32 1.0, %v1030_v44 }
 0x14a   : > { %793 = vst [vmem:[%s1308_s22] sm:$0xff] %v687_v20  ;;  %v786_v29 = vsel %vm785_vm10, %v1024_v62, %v782_v21  ;;  %v707_v34 = vadd.f32 %v1026_v45, %v706_v30  ;;  %v700_v38 = vor.u32 1.1754944e-38, %v699_v57 }
 0x14b   : > { %v791_v33 = vsel %vm1359_vm9, %v790_v22, %v786_v29  ;;  %v692_v18 = vadd.f32 %v1028_v63, %v691_v31  ;;  %1031 = vrcp.f32 %v668_v39  ;;  %v729_v55 = vand.u32 2147483648, %v668_v39 }
 0x14c   : > { %v792_v32 = vmul.f32 %v791_v33, %v1273_v42  ;;  %v711_v37 = vsel %vm710_vm14, %v1026_v45, %v707_v34  ;;  %v727_v58 = vand.u32 2147483647, %v668_v39  ;;  %vm723_vm4 = vweird.f32 %v668_v39 }
 0x14d   : > { %v716_v48 = vsel %vm713_vm0, %v715_v35, %v711_v37  ;;  %v696_v49 = vsel %vm695_vm1, %v1028_v63, %v692_v18  ;;  %v730_v61 = vor.u32 1.1754944e-38, %v729_v55 }
 0x14e   : > { %800 = vst [vmem:[%s1308_s22 + $0x38] sm:$0xff] %v792_v32  ;;  %v717_v42 = vmul.f32 %v716_v48, %v1276_v60  ;;  %v701_v50 = vsel %vm698_vm2, %v700_v38, %v696_v49  ;;  %vm728_vm6 = vcmp.eq.f32.partialorder %v727_v58, 8.507059e+37 }
 0x14f   : > { %v702_v40 = vmul.f32 %v701_v50, %v1280_v7 }
 0x150   : > { %795 = vst [vmem:[%s1308_s22 + $0x10] sm:$0xff] %v717_v42 }
 0x151   : > { %794 = vst [vmem:[%s1308_s22 + $0x8] sm:$0xff] %v702_v40  ;;  %v1032_v51 = vpop.eup %1031 }
 0x152   : > { %v719_v54 = vmul.f32 %v1032_v51, %v668_v39  ;;  %vm724_vm3 = vweird.f32 %v1032_v51 }
 0x153   : > { %vm725_vm5 = vmor %vm723_vm4, %vm724_vm3 }
 0x154   : > { %v720_v47 = vsub.f32 1.0, %v719_v54 }
 0x156   : > { %v721_v56 = vmul.f32 %v1032_v51, %v720_v47 }
 0x158   : > { %v722_v59 = vadd.f32 %v1032_v51, %v721_v56 }
 0x15a   : > { %v726_v60 = vsel %vm725_vm5, %v1032_v51, %v722_v59 }
 0x15b   : > { %v731_v62 = vsel %vm728_vm6, %v730_v61, %v726_v60 }
 0x15c   : > { %v732_v7 = vmul.f32 %v731_v62, %v1313_v36 }
 0x15e   : > { %796 = vst [vmem:[%s1308_s22 + $0x18] sm:$0xff] %v732_v7 }
 0x15f PF: > { %s14_s17 = sadd.s32 1, %s1055_s17   ;;  %s1410_s15 = smov %s1051_s16 }
 0x160   : > { %p11_p5 = scmp.ge.s32.totalorder %s14_s17, 4   ;;  %s1411_s16 = smov %s1413_s18 }
 0x162   :  { %13 = sbr.rel (!%p11_p5) target bundleno = 2 (0x2), region = 69 }

</bundles_post_ra>
